<compile_context>
chip_gen: v7x
topology: tpu7x:2x2x1
jax: 0.10.0
libtpu: 0.0.40
codegen_flags: <defaults>
</compile_context>

<pallas_src>
import jax
import jax.numpy as jnp
from jax.experimental import pallas as pl
from jax.experimental.pallas import tpu as pltpu


def _mlp_kernel(x_ref, w1_ref, b1_ref, w2_ref, b2_ref, w3_ref, b3_ref, o_ref):
    # All math in f32: the kernel is HBM-bound, MXU/VPU slack is free.
    x = x_ref[...]                                                   # (TN, D)

    h = jnp.dot(x, w1_ref[...],
                preferred_element_type=jnp.float32) + b1_ref[...]    # (TN, H)
    h = jnp.maximum(h, 0.0)

    h = jnp.dot(h, w2_ref[...],
                preferred_element_type=jnp.float32) + b2_ref[...]    # (TN, H)
    h = jnp.maximum(h, 0.0)

    # Dropout is identity in eval mode; BN affines already folded into w2/w3.
    o_ref[...] = (jnp.dot(h, w3_ref[...],
                          preferred_element_type=jnp.float32)
                  + b3_ref[...]).astype(o_ref.dtype)                 # (TN, O)


def _round_up(v, m):
    return ((v + m - 1) // m) * m


def _tensorcores_per_chip():
    """Best-effort TensorCores-per-chip query (v7x: 2, v5e/v6e: 1)."""
    try:
        info = pltpu.get_tpu_info()
        for attr in ("num_cores", "core_count", "tensorcores_per_chip",
                     "num_tensorcores"):
            n = getattr(info, attr, None)
            if isinstance(n, int) and n >= 1:
                return n
    except Exception:
        pass
    try:
        kind = jax.devices()[0].device_kind.lower()
        if "v7" in kind:
            return 2
    except Exception:
        pass
    return 1


def classification_forward(x, folded, *, tile_n=2048, out_dtype=jnp.float32):
    """x: [N, D] float32.  folded: dict with BN folded into linear layers."""
    N, D = x.shape
    H = folded["w2"].shape[0]
    O = folded["w3"].shape[1]

    w1 = folded["w1"].astype(jnp.float32)
    w2 = folded["w2"].astype(jnp.float32)
    w3 = folded["w3"].astype(jnp.float32)
    b1 = folded["b1"].astype(jnp.float32)
    b2 = folded["b2"].astype(jnp.float32)
    b3 = folded["b3"].astype(jnpp.float32) if False else folded["b3"].astype(jnp.float32)

    # Batch tile: multiple of 8, no larger than needed.
    tn = max(8, _round_up(min(tile_n, _round_up(max(N, 1), 8)), 8))

    # Only force a split for multi-TensorCore chips (v7x); and there, keep
    # grid_n even so both cores get the same number of blocks.
    if _tensorcores_per_chip() >= 2 and N >= 16:
        g = pl.cdiv(N, tn)
        if g % 2 != 0:
            g += 1
            tn = max(8, _round_up(pl.cdiv(N, g), 8))
    grid_n = pl.cdiv(N, tn)

    const = lambda i: (0, 0)
    flops = 2 * N * (D * H + H * H + H * O)
    out_bytes = jnp.dtype(out_dtype).itemsize
    bytes_accessed = (N * D * 4 + N * O * out_bytes
                      + (w1.size + w2.size + w3.size) * 4
                      + (b1.size + b2.size + b3.size) * 4)

    out = pl.pallas_call(
        _mlp_kernel,
        out_shape=jax.ShapeDtypeStruct((N, O), out_dtype),
        grid=(grid_n,),
        in_specs=[
            pl.BlockSpec((tn, D), lambda i: (i, 0)),   # x tile
            pl.BlockSpec((D, H), const),               # w1 (resident)
            pl.BlockSpec((1, H), const),               # b1
            pl.BlockSpec((H, H), const),               # w2 (BN1 folded)
            pl.BlockSpec((1, H), const),               # b2 (BN1 folded)
            pl.BlockSpec((H, O), const),               # w3 (BN2 folded)
            pl.BlockSpec((1, O), const),               # b3 (BN2 folded)
        ],
        out_specs=pl.BlockSpec((tn, O), lambda i: (i, 0)),
        compiler_params=pltpu.CompilerParams(
            dimension_semantics=("parallel",),
            vmem_limit_bytes=32 * 1024 * 1024),
        cost_estimate=pl.CostEstimate(
            flops=flops, transcendentals=0, bytes_accessed=bytes_accessed),
    )(x, w1, b1, w2, b2, w3, b3)

    return out


def fold_bn_into_linears(p):
    """Fold eval-mode BatchNorm affine (scale s, shift t) into the NEXT linear.

    relu(x@W1+b1)*s1 + t1 then @W2 + b2  ==  relu(x@W1+b1) @ (s1.T*W2) + (t1@W2+b2)
    (exact, since the BN affine sits between the ReLU and the next matmul).
    """
    w2f = p["w2"] * p["s1"].T                 # row-scale of W2
    b2f = p["t1"] @ p["w2"] + p["b2"]
    w3f = p["w3"] * p["s2"].T
    b3f = p["t2"] @ p["w3"] + p["b3"]
    return dict(w1=p["w1"], b1=p["b1"], w2=w2f, b2=b2f, w3=w3f, b3=b3f)


def make_params(key, inputs_size, hidden=64, n_classes=3, eps=1e-5):
    """Deterministic synthetic parameters matching Classification.__init__."""
    ks = jax.random.split(key, 7)
    f32 = jnp.float32

    w1 = jax.random.normal(ks[0], (inputs_size, hidden), f32) * 0.1
    b1 = jax.random.normal(ks[1], (1, hidden), f32) * 0.01
    w2 = jax.random.normal(ks[2], (hidden, hidden), f32) * 0.1
    b2 = jax.random.normal(ks[3], (1, hidden), f32) * 0.01
    w3 = jax.random.normal(ks[4], (hidden, n_classes), f32) * 0.1
    b3 = jax.random.normal(ks[5], (1, n_classes), f32) * 0.01

    def bn(kg, kb, km, kv):
        gamma = 1.0 + 0.1 * jax.random.normal(kg, (1, hidden), f32)
        beta = 0.1 * jax.random.normal(kb, (1, hidden), f32)
        rmean = 0.05 * jax.random.normal(km, (1, hidden), f32)
        rvar = 1.0 + 0.1 * jax.random.uniform(kv, (1, hidden), f32)
        scale = gamma / jnp.sqrt(rvar + eps)
        shift = beta - rmean * scale
        return scale, shift

    kbn = jax.random.split(ks[6], 8)
    s1, t1 = bn(kbn[0], kbn[1], kbn[2], kbn[3])
    s2, t2 = bn(kbn[4], kbn[5], kbn[6], kbn[7])

    return dict(w1=w1, b1=b1, s1=s1, t1=t1,
                w2=w2, b2=b2, s2=s2, t2=t2,
                w3=w3, b3=b3)


def reference_forward(x, p):
    """Plain-JAX f32 reference (eval-mode forward, unfolded BN)."""
    h = jnp.maximum(x @ p["w1"] + p["b1"], 0.0) * p["s1"] + p["t1"]
    h = jnp.maximum(h @ p["w2"] + p["b2"], 0.0) * p["s2"] + p["t2"]
    return h @ p["w3"] + p["b3"]


if __name__ == "__main__":
    key = jax.random.PRNGKey(0)
    k_x, k_p = jax.random.split(key)

    # Small shapes; N deliberately not a multiple of 8 / the tile so the
    # non-divisible tail-block path (and the v7x even-grid split) is exercised.
    N, D = 37, 16
    x = jax.random.normal(k_x, (N, D), jnp.float32)
    params = make_params(k_p, inputs_size=D)
    folded = fold_bn_into_linears(params)

    out = classification_forward(x, folded)
    out = jax.block_until_ready(out)

    ref = reference_forward(x, params)
    assert out.shape == (N, 3), out.shape
    # f32 matmuls + exact BN folding -> tight tolerance vs f32 reference.
    assert jnp.allclose(out, ref, atol=1e-4, rtol=1e-4), (
        float(jnp.max(jnp.abs(out - ref))))

    print("KERNEL_OK")
</pallas_src>

<mosaic_0001>
module attributes {stable_mosaic.version = 11 : i64} {
  func.func @_mlp_kernel(%arg0: i32, %arg1: memref<40x16xf32, #tpu.memory_space<vmem>>, %arg2: memref<16x64xf32, #tpu.memory_space<vmem>>, %arg3: memref<1x64xf32, #tpu.memory_space<vmem>>, %arg4: memref<64x64xf32, #tpu.memory_space<vmem>>, %arg5: memref<1x64xf32, #tpu.memory_space<vmem>>, %arg6: memref<64x3xf32, #tpu.memory_space<vmem>>, %arg7: memref<1x3xf32, #tpu.memory_space<vmem>>, %arg8: memref<40x3xf32, #tpu.memory_space<vmem>>) attributes {dimension_semantics = [#tpu.dimension_semantics<parallel>], iteration_bounds = array<i64: 1>, scalar_prefetch = 0 : i64, scratch_operands = 0 : i64, tpu.core_type = #tpu.core_type<tc>, window_params = [{transform_indices = @transform_0, window_bounds = array<i64: 40, 16>}, {pipeline_mode = #tpu.pipeline_mode<synchronous>, transform_indices = @transform_1, window_bounds = array<i64: 16, 64>}, {pipeline_mode = #tpu.pipeline_mode<synchronous>, transform_indices = @transform_2, window_bounds = array<i64: 1, 64>}, {pipeline_mode = #tpu.pipeline_mode<synchronous>, transform_indices = @transform_3, window_bounds = array<i64: 64, 64>}, {pipeline_mode = #tpu.pipeline_mode<synchronous>, transform_indices = @transform_4, window_bounds = array<i64: 1, 64>}, {pipeline_mode = #tpu.pipeline_mode<synchronous>, transform_indices = @transform_5, window_bounds = array<i64: 64, 3>}, {pipeline_mode = #tpu.pipeline_mode<synchronous>, transform_indices = @transform_6, window_bounds = array<i64: 1, 3>}, {transform_indices = @transform_7, window_bounds = array<i64: 40, 3>}]} {
    %c0 = arith.constant 0 : index
    %c0_0 = arith.constant 0 : index
    %0 = vector.load %arg1[%c0, %c0_0] : memref<40x16xf32, #tpu.memory_space<vmem>>, vector<40x16xf32>
    %c0_1 = arith.constant 0 : index
    %c0_2 = arith.constant 0 : index
    %1 = vector.load %arg2[%c0_1, %c0_2] : memref<16x64xf32, #tpu.memory_space<vmem>>, vector<16x64xf32>
    %cst = arith.constant dense<0.000000e+00> : vector<40x64xf32>
    %2 = tpu.matmul %0, %1, %cst {dimension_numbers = #tpu.dot_dimension_numbers<[1], [0], [0], [1], [0, 0, 1, 1], [], []>} : vector<40x16xf32>, vector<16x64xf32>, vector<40x64xf32> -> vector<40x64xf32>
    %c0_3 = arith.constant 0 : index
    %c0_4 = arith.constant 0 : index
    %3 = vector.load %arg3[%c0_3, %c0_4] : memref<1x64xf32, #tpu.memory_space<vmem>>, vector<1x64xf32>
    %4 = vector.broadcast %3 : vector<1x64xf32> to vector<40x64xf32>
    %5 = arith.addf %2, %4 : vector<40x64xf32>
    %cst_5 = arith.constant 0.000000e+00 : f32
    %6 = vector.broadcast %cst_5 : f32 to vector<40x64xf32>
    %7 = arith.maximumf %5, %6 : vector<40x64xf32>
    %c0_6 = arith.constant 0 : index
    %c0_7 = arith.constant 0 : index
    %8 = vector.load %arg4[%c0_6, %c0_7] : memref<64x64xf32, #tpu.memory_space<vmem>>, vector<64x64xf32>
    %cst_8 = arith.constant dense<0.000000e+00> : vector<40x64xf32>
    %9 = tpu.matmul %7, %8, %cst_8 {dimension_numbers = #tpu.dot_dimension_numbers<[1], [0], [0], [1], [0, 0, 1, 1], [], []>} : vector<40x64xf32>, vector<64x64xf32>, vector<40x64xf32> -> vector<40x64xf32>
    %c0_9 = arith.constant 0 : index
    %c0_10 = arith.constant 0 : index
    %10 = vector.load %arg5[%c0_9, %c0_10] : memref<1x64xf32, #tpu.memory_space<vmem>>, vector<1x64xf32>
    %11 = vector.broadcast %10 : vector<1x64xf32> to vector<40x64xf32>
    %12 = arith.addf %9, %11 : vector<40x64xf32>
    %cst_11 = arith.constant 0.000000e+00 : f32
    %13 = vector.broadcast %cst_11 : f32 to vector<40x64xf32>
    %14 = arith.maximumf %12, %13 : vector<40x64xf32>
    %c0_12 = arith.constant 0 : index
    %c0_13 = arith.constant 0 : index
    %15 = vector.load %arg6[%c0_12, %c0_13] : memref<64x3xf32, #tpu.memory_space<vmem>>, vector<64x3xf32>
    %cst_14 = arith.constant dense<0.000000e+00> : vector<40x3xf32>
    %16 = tpu.matmul %14, %15, %cst_14 {dimension_numbers = #tpu.dot_dimension_numbers<[1], [0], [0], [1], [0, 0, 1, 1], [], []>} : vector<40x64xf32>, vector<64x3xf32>, vector<40x3xf32> -> vector<40x3xf32>
    %c0_15 = arith.constant 0 : index
    %c0_16 = arith.constant 0 : index
    %17 = vector.load %arg7[%c0_15, %c0_16] : memref<1x3xf32, #tpu.memory_space<vmem>>, vector<1x3xf32>
    %18 = vector.broadcast %17 : vector<1x3xf32> to vector<40x3xf32>
    %19 = arith.addf %16, %18 : vector<40x3xf32>
    %c0_17 = arith.constant 0 : index
    %c0_18 = arith.constant 0 : index
    %20 = vector.load %arg8[%c0_17, %c0_18] : memref<40x3xf32, #tpu.memory_space<vmem>>, vector<40x3xf32>
    tpu.vector_store %arg8[%c0_17, %c0_18], %19 {strides = array<i32>} : memref<40x3xf32, #tpu.memory_space<vmem>>, vector<40x3xf32>,
    return
  }
  func.func @transform_0(%arg0: i32) -> (i32, i32) {
    %c0_i32 = arith.constant 0 : i32
    %c0_i32_0 = arith.constant 0 : i32
    return %arg0, %c0_i32 : i32, i32
  }
  func.func @transform_1(%arg0: i32) -> (i32, i32) {
    %c0_i32 = arith.constant 0 : i32
    %c0_i32_0 = arith.constant 0 : i32
    %c0_i32_1 = arith.constant 0 : i32
    return %c0_i32, %c0_i32_0 : i32, i32
  }
  func.func @transform_2(%arg0: i32) -> (i32, i32) {
    %c0_i32 = arith.constant 0 : i32
    %c0_i32_0 = arith.constant 0 : i32
    %c0_i32_1 = arith.constant 0 : i32
    return %c0_i32, %c0_i32_0 : i32, i32
  }
  func.func @transform_3(%arg0: i32) -> (i32, i32) {
    %c0_i32 = arith.constant 0 : i32
    %c0_i32_0 = arith.constant 0 : i32
    %c0_i32_1 = arith.constant 0 : i32
    return %c0_i32, %c0_i32_0 : i32, i32
  }
  func.func @transform_4(%arg0: i32) -> (i32, i32) {
    %c0_i32 = arith.constant 0 : i32
    %c0_i32_0 = arith.constant 0 : i32
    %c0_i32_1 = arith.constant 0 : i32
    return %c0_i32, %c0_i32_0 : i32, i32
  }
  func.func @transform_5(%arg0: i32) -> (i32, i32) {
    %c0_i32 = arith.constant 0 : i32
    %c0_i32_0 = arith.constant 0 : i32
    %c0_i32_1 = arith.constant 0 : i32
    return %c0_i32, %c0_i32_0 : i32, i32
  }
  func.func @transform_6(%arg0: i32) -> (i32, i32) {
    %c0_i32 = arith.constant 0 : i32
    %c0_i32_0 = arith.constant 0 : i32
    %c0_i32_1 = arith.constant 0 : i32
    return %c0_i32, %c0_i32_0 : i32, i32
  }
  func.func @transform_7(%arg0: i32) -> (i32, i32) {
    %c0_i32 = arith.constant 0 : i32
    %c0_i32_0 = arith.constant 0 : i32
    return %arg0, %c0_i32 : i32, i32
  }
}

</mosaic_0001>

<bundles_post_ra>
// kernel: tpu_custom_call.1
= control target key start
LH: loop header
LB: loop body
LE: loop exit
PB: predicated region body
PF: predicated region fallthrough
CT: control target
= control target key end

     0   :  { %v571_v0 = vmov 0.0|0.0   ;;  %vm572_vm0 = vmmov 0   ;;  %v573_v3 = vmov 0.0   ;;  %vm40_vm1 = vcmask 130048   ;;  %s767_s1 = inlined_call_operand.vmem [shape: f32[16,64], index: 1, kind: input, shape index: {}]   ;;  %s768_s3 = inlined_call_operand.vmem [shape: f32[64,64], index: 3, kind: input, shape index: {}]   ;;  %s769_s0 = inlined_call_operand.vmem [shape: f32[37,16], index: 0, kind: input, shape index: {}]   ;;  %s770_s5 = inlined_call_operand.vmem [shape: f32[64,3], index: 5, kind: input, shape index: {}]   ;;  %s771_s2 = inlined_call_operand.vmem [shape: f32[1,64], index: 2, kind: input, shape index: {}]   ;;  %s772_s4 = inlined_call_operand.vmem [shape: f32[1,64], index: 4, kind: input, shape index: {}]   ;;  %s773_s6 = inlined_call_operand.vmem [shape: f32[1,3], index: 6, kind: input, shape index: {}]   ;;  %s774_s7 = inlined_call_operand.vmem [shape: f32[37,3], index: 7, kind: output, shape index: {}]  }
   0x1   :  { %539 = vmatprep.subr.bf16.mxu0 %v571_v0  ;;  %v31_v1 = vld [vmem:[%s767_s1] sm:$0xff]  ;;  %v32_v2 = vld [vmem:[%s767_s1 + $0x8] sm:$0xff]  ;;  %462 = vmatprep.mubr.msk.f32.mxu0 %vm572_vm0, %v573_v3  ;;  %v153_v10 = vld [vmem:[%s768_s3 + $0x10] sm:$0xff]  ;;  %vm166_vm2 = vcmask 523264   ;;  %vm397_vm3 = vcmask 23552  }
   0x2   :  { %v540_v4 = vpack.c.bf16 %v32_v2, %v31_v1  ;;  %566 = vmatprep.subr.bf16.mxu1 %v571_v0  ;;  %474 = vmatprep.mubr.msk.f32.mxu1 %vm572_vm0, %v573_v3  ;;  %v151_v5 = vld [vmem:[%s768_s3] sm:$0xff]  ;;  %v152_v6 = vld [vmem:[%s768_s3 + $0x8] sm:$0xff]  ;;  %v154_v11 = vld [vmem:[%s768_s3 + $0x18] sm:$0xff] }
   0x3   :  { %v26_v7 = vld [vmem:[%s769_s0] sm:$0xff]  ;;  %v543_v9 = vpack.c.bf16 %v152_v6, %v151_v5  ;;  %v27_v12 = vld [vmem:[%s769_s0 + $0x8] sm:$0xff]  ;;  %v546_v13 = vpack.c.bf16 %v154_v11, %v153_v10  ;;  %v28_v16 = vld [vmem:[%s769_s0 + $0x10] sm:$0xff] }
   0x4   :  { %541 = vmatpush3.bf16.msra.mxu0 %v540_v4  ;;  %567 = vmatpush3.bf16.msra.mxu1 %v540_v4  ;;  %v30_v8 = vld [vmem:[%s769_s0 + $0x20] sm:$0xff]  ;;  %v156_v15 = vld [vmem:[%s768_s3 + $0x28] sm:$0xff]  ;;  %v29_v18 = vld [vmem:[%s769_s0 + $0x18] sm:$0xff] }
   0x5   :  { %542 = vmatprep.subr.bf16.mxu1 %v571_v0  ;;  %554 = vmatprep.subr.bf16.mxu0 %v571_v0  ;;  %v155_v14 = vld [vmem:[%s768_s3 + $0x20] sm:$0xff]  ;;  %v157_v19 = vld [vmem:[%s768_s3 + $0x30] sm:$0xff]  ;;  %v158_v20 = vld [vmem:[%s768_s3 + $0x38] sm:$0xff] }
   0x6   :  { %v549_v17 = vpack.c.bf16 %v156_v15, %v155_v14  ;;  %v552_v21 = vpack.c.bf16 %v158_v20, %v157_v19  ;;  %v277_v22 = vld [vmem:[%s770_s5] sm:$0xff]  ;;  %v278_v23 = vld [vmem:[%s770_s5 + $0x8] sm:$0xff]  ;;  %v279_v24 = vld [vmem:[%s770_s5 + $0x10] sm:$0xff] }
   0x7   :  { %463 = vmatmul.mubr.msk.f32.vlgmr.msra.gmra.mrb[0].mxu0 %vm40_vm1, %v26_v7  ;;  %475 = vmatmul.mubr.msk.f32.vlgmr.msra.gmra.mrb[0].mxu1 %vm40_vm1, %v30_v8  ;;  %v555_v25 = vpack.c.bf16 %v278_v23, %v277_v22  ;;  %v280_v26 = vld [vmem:[%s770_s5 + $0x18] sm:$0xff]  ;;  %v281_v28 = vld [vmem:[%s770_s5 + $0x20] sm:$0xff]  ;;  %v282_v29 = vld [vmem:[%s770_s5 + $0x28] sm:$0xff] }
   0x8   :  { %465 = vmatprep.mubr.msk.f32.mxu0 %vm572_vm0, %v573_v3  ;;  %544 = vmatpush3.bf16.msra.mxu1 %v543_v9  ;;  %v558_v27 = vpack.c.bf16 %v280_v26, %v279_v24  ;;  %v561_v30 = vpack.c.bf16 %v282_v29, %v281_v28  ;;  %v407_v31 = vld [vmem:[%s771_s2] ss:$0 sm:$0xff]  ;;  %v283_v52 = vld [vmem:[%s770_s5 + $0x30] sm:$0xff]  ;;  %v284_v53 = vld [vmem:[%s770_s5 + $0x38] sm:$0xff] }
   0x9   :  { %545 = vmatprep.subr.bf16.mxu1 %v571_v0  ;;  %493 = vmatprep.mubr.msk.f32.mxu1 %vm572_vm0, %v573_v3  ;;  %v564_v54 = vpack.c.bf16 %v284_v53, %v283_v52  ;;  %v413_v55 = vld [vmem:[%s772_s4] ss:$0 sm:$0xff] }
   0xa   :  { %556 = vmatpush3.bf16.msra.mxu0 %v555_v25 }
   0xb   :  { %466 = vmatmul.mubr.msk.f32.gmra.mrb[2].mxu0 %vm40_vm1, %v27_v12  ;;  %557 = vmatprep.subr.bf16.mxu0 %v571_v0 }
   0xc   :  { %468 = vmatprep.mubr.msk.f32.mxu0 %vm572_vm0, %v573_v3  ;;  %547 = vmatpush3.bf16.msra.mxu1 %v546_v13  ;;  %v419_v13 = vld [vmem:[%s773_s6] ss:$0 sm:$0xff] }
   0xd   :  { %548 = vmatprep.subr.bf16.mxu1 %v571_v0 }
   0xe   :  { %559 = vmatpush3.bf16.msra.mxu0 %v558_v27 }
   0xf   :  { %469 = vmatmul.mubr.msk.f32.gmra.mrb[4].mxu0 %vm40_vm1, %v28_v16  ;;  %560 = vmatprep.subr.bf16.mxu0 %v571_v0 }
  0x10   :  { %471 = vmatprep.mubr.msk.f32.mxu0 %vm572_vm0, %v573_v3  ;;  %550 = vmatpush3.bf16.msra.mxu1 %v549_v17 }
  0x11   :  { %551 = vmatprep.subr.bf16.mxu1 %v571_v0 }
  0x12   :  { %562 = vmatpush3.bf16.msra.mxu0 %v561_v30 }
  0x13   :  { %472 = vmatmul.mubr.msk.f32.gmra.mrb[6].mxu0 %vm40_vm1, %v29_v18  ;;  %563 = vmatprep.subr.bf16.mxu0 %v571_v0 }
  0x14   :  { %524 = vmatprep.mubr.msk.f32.mxu0 %vm572_vm0, %v573_v3  ;;  %553 = vmatpush3.bf16.msra.mxu1 %v552_v21 }
  0x16   :  { %565 = vmatpush3.bf16.msra.mxu0 %v564_v54 }
  0xda   :  { %v122_v32 = vpop.f32.mrb[0].mxu0  ;;  %v142_v33 = vpop.f32.mrb[0].mxu1 }
  0xdb   :  { %v123_v34 = vadd.f32 %v407_v31, %v122_v32  ;;  %v464_v35 = vpop.f32.mrb[1].mxu0  ;;  %v476_v36 = vpop.f32.mrb[1].mxu1  ;;  %v143_v49 = vadd.f32 %v407_v31, %v142_v33 }
  0xdd   :  { %v146_v37 = vmax.f32 %v123_v34, 0.0  ;;  %v150_v51 = vmax.f32 %v143_v49, 0.0 }
  0xde   :  { %v127_v38 = vpop.f32.mrb[2].mxu0 }
  0xdf   :  { %v128_v39 = vadd.f32 %v407_v31, %v127_v38  ;;  %v467_v40 = vpop.f32.mrb[3].mxu0  ;;  %494 = vmatmul.mubr.msk.f32.vlgmr.msra.gmra.mrb[2].mxu1 %vm166_vm2, %v146_v37 }
  0xe0   :  { %496 = vmatprep.mubr.msk.f32.mxu1 %vm572_vm0, %v573_v3 }
  0xe1   :  { %v147_v41 = vmax.f32 %v128_v39, 0.0 }
  0xe2   :  { %v132_v42 = vpop.f32.mrb[4].mxu0 }
  0xe3   :  { %v133_v43 = vadd.f32 %v407_v31, %v132_v42  ;;  %v470_v44 = vpop.f32.mrb[5].mxu0  ;;  %497 = vmatmul.mubr.msk.f32.gmra.mrb[4].mxu1 %vm166_vm2, %v147_v41 }
  0xe4   :  { %499 = vmatprep.mubr.msk.f32.mxu1 %vm572_vm0, %v573_v3 }
  0xe5   :  { %v148_v45 = vmax.f32 %v133_v43, 0.0 }
  0xe6   :  { %v137_v46 = vpop.f32.mrb[6].mxu0 }
  0xe7   :  { %v138_v47 = vadd.f32 %v407_v31, %v137_v46  ;;  %v473_v48 = vpop.f32.mrb[7].mxu0  ;;  %500 = vmatmul.mubr.msk.f32.gmra.mrb[6].mxu1 %vm166_vm2, %v148_v45 }
  0xe8   :  { %502 = vmatprep.mubr.msk.f32.mxu1 %vm572_vm0, %v573_v3 }
  0xe9   :  { %v149_v50 = vmax.f32 %v138_v47, 0.0 }
  0xeb   :  { %503 = vmatmul.mubr.msk.f32.gmra.mrb[8].mxu1 %vm166_vm2, %v149_v50 }
  0xec   :  { %505 = vmatprep.mubr.msk.f32.mxu1 %vm572_vm0, %v573_v3 }
  0xef   :  { %506 = vmatmul.mubr.msk.f32.gmra.mrb[10].mxu1 %vm166_vm2, %v150_v51 }
 0x1b2   :  { %v248_v56 = vpop.f32.mrb[2].mxu1 }
 0x1b3   :  { %v249_v57 = vadd.f32 %v413_v55, %v248_v56  ;;  %v495_v58 = vpop.f32.mrb[3].mxu1 }
 0x1b5   :  { %v272_v59 = vmax.f32 %v249_v57, 0.0 }
 0x1b6   :  { %v253_v60 = vpop.f32.mrb[4].mxu1 }
 0x1b7   :  { %v254_v61 = vadd.f32 %v413_v55, %v253_v60  ;;  %v498_v62 = vpop.f32.mrb[5].mxu1  ;;  %525 = vmatmul.mubr.msk.f32.vlgmr.msra.gmra.mrb[8].mxu0 %vm166_vm2, %v272_v59 }
 0x1b8   :  { %527 = vmatprep.mubr.msk.f32.mxu0 %vm572_vm0, %v573_v3 }
 0x1b9   :  { %v273_v63 = vmax.f32 %v254_v61, 0.0 }
 0x1ba   :  { %v258_v0 = vpop.f32.mrb[6].mxu1 }
 0x1bb   :  { %v259_v1 = vadd.f32 %v413_v55, %v258_v0  ;;  %v501_v2 = vpop.f32.mrb[7].mxu1  ;;  %528 = vmatmul.mubr.msk.f32.gmra.mrb[10].mxu0 %vm166_vm2, %v273_v63 }
 0x1bc   :  { %530 = vmatprep.mubr.msk.f32.mxu0 %vm572_vm0, %v573_v3 }
 0x1bd   :  { %v274_v4 = vmax.f32 %v259_v1, 0.0 }
 0x1be   :  { %v263_v5 = vpop.f32.mrb[8].mxu1 }
 0x1bf   :  { %v264_v6 = vadd.f32 %v413_v55, %v263_v5  ;;  %v504_v7 = vpop.f32.mrb[9].mxu1  ;;  %531 = vmatmul.mubr.msk.f32.gmra.mrb[12].mxu0 %vm166_vm2, %v274_v4 }
 0x1c0   :  { %533 = vmatprep.mubr.msk.f32.mxu0 %vm572_vm0, %v573_v3 }
 0x1c1   :  { %v275_v8 = vmax.f32 %v264_v6, 0.0 }
 0x1c2   :  { %v268_v9 = vpop.f32.mrb[10].mxu1 }
 0x1c3   :  { %v269_v10 = vadd.f32 %v413_v55, %v268_v9  ;;  %v507_v11 = vpop.f32.mrb[11].mxu1  ;;  %534 = vmatmul.mubr.msk.f32.gmra.mrb[14].mxu0 %vm166_vm2, %v275_v8 }
 0x1c4   :  { %536 = vmatprep.mubr.msk.f32.mxu0 %vm572_vm0, %v573_v3 }
 0x1c5   :  { %v276_v12 = vmax.f32 %v269_v10, 0.0 }
 0x1c7   :  { %537 = vmatmul.mubr.msk.f32.gmra.mrb[16].mxu0 %vm166_vm2, %v276_v12 }
 0x28a   :  { %v373_v14 = vpop.f32.mrb[8].mxu0 }
 0x28b   :  { %v374_v15 = vadd.f32 %v419_v13, %v373_v14  ;;  %v526_v16 = vpop.f32.mrb[9].mxu0 }
 0x28d   :  { %398 = vst.msk [vmem:[%s774_s7] sm:$0xff] %vm397_vm3, %v374_v15 }
 0x28e   :  { %v378_v17 = vpop.f32.mrb[10].mxu0 }
 0x28f   :  { %v379_v18 = vadd.f32 %v419_v13, %v378_v17  ;;  %v529_v19 = vpop.f32.mrb[11].mxu0 }
 0x291   :  { %399 = vst.msk [vmem:[%s774_s7 + $0x8] sm:$0xff] %vm397_vm3, %v379_v18 }
 0x292   :  { %v383_v3 = vpop.f32.mrb[12].mxu0 }
 0x293   :  { %v384_v20 = vadd.f32 %v419_v13, %v383_v3  ;;  %v532_v21 = vpop.f32.mrb[13].mxu0 }
 0x295   :  { %400 = vst.msk [vmem:[%s774_s7 + $0x10] sm:$0xff] %vm397_vm3, %v384_v20 }
 0x296   :  { %v388_v22 = vpop.f32.mrb[14].mxu0 }
 0x297   :  { %v389_v23 = vadd.f32 %v419_v13, %v388_v22  ;;  %v535_v24 = vpop.f32.mrb[15].mxu0 }
 0x299   :  { %401 = vst.msk [vmem:[%s774_s7 + $0x18] sm:$0xff] %vm397_vm3, %v389_v23 }
 0x29a   :  { %v393_v25 = vpop.f32.mrb[16].mxu0 }
 0x29b   :  { %v394_v26 = vadd.f32 %v419_v13, %v393_v25  ;;  %v538_v27 = vpop.f32.mrb[17].mxu0 }
 0x29d   :  { %402 = vst.msk [vmem:[%s774_s7 + $0x20] sm:$0xff] %vm397_vm3, %v394_v26 }

</bundles_post_ra>
